<compile_context>
chip_gen: v7x
topology: tpu7x:2x2x1
jax: 0.10.0
libtpu: 0.0.40
codegen_flags: <defaults>
</compile_context>

<pallas_src>
import jax
import jax.numpy as jnp
from jax import lax
from jax.experimental import pallas as pl
from jax.experimental.pallas import tpu as pltpu


def canonical_ordering_kernel(x_ref, w_ref, o_ref):
    # x_ref: (BB, T, D), w_ref: (1, D), o_ref: (BB, T, D)
    x = x_ref[...]                                   # (BB, T, D), native dtype
    bb, t, d = x.shape

    # --- projection: z[b, i] = sum_d x[b, i, d] * w[d] ---------------------
    # Multiply in x's dtype (no f32 copy of the whole block); accumulate the
    # lane reduce in f32.  The (1, 1, D) weight broadcast is left implicit.
    w = w_ref[...].astype(x.dtype).reshape(1, 1, d)
    z = jnp.sum((x * w).astype(jnp.float32), axis=-1)          # (BB, T) lane-dense

    # --- stable ascending sort ranks (ties broken by original index) -------
    # Single small (T, T) tri mask + one (T, T) iota; everything else is
    # implicit broadcasting against (BB, 1, T) / (BB, T, 1) views of z.
    row_i = lax.broadcasted_iota(jnp.int32, (t, t), 0)          # value i
    col_j = lax.broadcasted_iota(jnp.int32, (t, t), 1)          # value j
    tri = col_j < row_i                                          # (T, T) j < i

    zi = z[:, :, None]                                           # (BB, T, 1)
    zj = z[:, None, :]                                           # (BB, 1, T)
    cmp = (zj < zi) | ((zj == zi) & tri[None, :, :])             # (BB, T, T)
    rank = jnp.sum(cmp.astype(jnp.int32), axis=2)                # (BB, T)

    # --- one-hot permutation P[b, k, i] = (rank[b, i] == k) -----------------
    # Reuse row_i as the "k" iota: row_i[k, i] == k.
    perm = (rank[:, None, :] == row_i[None, :, :]).astype(x.dtype)  # (BB, T, T)

    # --- row gather via batched one-hot matmul ------------------------------
    # perm entries are exactly 0/1 -> exact gather in x's own dtype with f32
    # accumulation (one nonzero term per output element).
    out = jnp.einsum('bkt,btd->bkd', perm, x,
                     preferred_element_type=jnp.float32)
    o_ref[...] = out.astype(o_ref.dtype)


def _tpu_vmem_capacity():
    """Best-effort per-core VMEM capacity in bytes (None if unknown)."""
    try:
        return int(pltpu.get_tpu_info().vmem_capacity_bytes)
    except Exception:
        return None


def canonical_ordering(x, projection, *, block_batch=None):
    """x: (B, T, D), projection: (D, 1) -> (B, T, D) rows sorted by x @ projection."""
    batch, t, dim = x.shape
    proj = projection.reshape(1, dim)    # lane-dense weight (avoid width-1 lane DMA)
    isz = x.dtype.itemsize

    # --- chip-aware VMEM budget ---------------------------------------------
    vmem_cap = _tpu_vmem_capacity()
    is_v7x = vmem_cap is not None and vmem_cap <= (64 << 20)   # 64 MiB/TC, 2 TCs
    if is_v7x:
        vmem_limit = 32 << 20            # half of physical, headroom for 2x in/out bufs
    else:
        vmem_limit = 64 << 20            # v5e/v6e: 128 MiB physical
    budget = (vmem_limit * 3) // 4       # leave pipeline / compiler headroom

    # --- block_batch from the *real* per-batch footprint ---------------------
    # double-buffered in + out blocks, f32 product + f32 matmul accumulator,
    # all-pairs compare/rank temporaries, and the one-hot perm in x's dtype.
    per_batch = (4 * t * dim * isz       # 2x in + 2x out pipeline buffers
                 + 2 * t * dim * 4       # x*w product + einsum f32 accumulator
                 + 5 * t * t * 4         # zi/zj/cmp/rank-compare temporaries
                 + t * t * isz)          # one-hot perm
    if block_batch is None:
        block_batch = max(1, min(batch, budget // max(1, per_batch)))
        if is_v7x and batch >= 2:
            # Only v7x has 2 TensorCores to shard the "parallel" axis across.
            block_batch = max(1, min(block_batch, batch // 2))
        while batch % block_batch:
            block_batch -= 1
    grid = (batch // block_batch,)

    cost = pl.CostEstimate(
        flops=batch * (2 * t * dim + 2 * t * t + 2 * t * t * dim),
        transcendentals=0,
        bytes_accessed=2 * batch * t * dim * isz + dim * 4,
    )

    return pl.pallas_call(
        canonical_ordering_kernel,
        out_shape=jax.ShapeDtypeStruct((batch, t, dim), x.dtype),
        grid_spec=pltpu.PrefetchScalarGridSpec(
            num_scalar_prefetch=0,
            grid=grid,
            in_specs=[
                pl.BlockSpec((block_batch, t, dim), lambda b: (b, 0, 0)),
                pl.BlockSpec((1, dim), lambda b: (0, 0)),
            ],
            out_specs=pl.BlockSpec((block_batch, t, dim), lambda b: (b, 0, 0)),
        ),
        compiler_params=pltpu.CompilerParams(
            dimension_semantics=("parallel",),
            vmem_limit_bytes=vmem_limit),
        cost_estimate=cost,
    )(x, proj)


def canonical_ordering_ref(x, projection):
    # pure-JAX reference of the PyTorch forward (stable ascending sort)
    z = x @ projection                          # (B, T, 1)
    indices = jnp.argsort(z[..., 0], axis=1)    # (B, T)
    return jnp.take_along_axis(x, indices[..., None], axis=1)


if __name__ == "__main__":
    batch, t, dim = 2, 8, 32   # embedding_dim = 32, sequence length t = 8

    key = jax.random.PRNGKey(0)
    kx, kw = jax.random.split(key)
    x = jax.random.normal(kx, (batch, t, dim), dtype=jnp.float32)

    # deterministic synthetic "buffer": uniform(-1, 1) projection of shape (embedding_dim, 1)
    projection = jax.random.uniform(kw, (dim, 1), dtype=jnp.float32,
                                    minval=-1.0, maxval=1.0)

    out = canonical_ordering(x, projection)
    out = jax.block_until_ready(out)

    ref = canonical_ordering_ref(x, projection)
    assert out.shape == (batch, t, dim)
    assert jnp.allclose(out, ref, atol=1e-5, rtol=1e-5), "mismatch vs reference"

    print("KERNEL_OK")
</pallas_src>

<mosaic_0001>
module attributes {stable_mosaic.version = 11 : i64} {
  func.func @canonical_ordering_kernel(%arg0: i32, %arg1: memref<2x8x32xf32, #tpu.memory_space<vmem>>, %arg2: memref<1x32xf32, #tpu.memory_space<vmem>>, %arg3: memref<2x8x32xf32, #tpu.memory_space<vmem>>) attributes {dimension_semantics = [#tpu.dimension_semantics<parallel>], iteration_bounds = array<i64: 1>, scalar_prefetch = 0 : i64, scratch_operands = 0 : i64, tpu.core_type = #tpu.core_type<tc>, window_params = [{transform_indices = @transform_0, window_bounds = array<i64: 2, 8, 32>}, {pipeline_mode = #tpu.pipeline_mode<synchronous>, transform_indices = @transform_1, window_bounds = array<i64: 1, 32>}, {transform_indices = @transform_2, window_bounds = array<i64: 2, 8, 32>}]} {
    %c0 = arith.constant 0 : index
    %c0_0 = arith.constant 0 : index
    %c0_1 = arith.constant 0 : index
    %0 = vector.load %arg1[%c0, %c0_0, %c0_1] : memref<2x8x32xf32, #tpu.memory_space<vmem>>, vector<2x8x32xf32>
    %c0_2 = arith.constant 0 : index
    %c0_3 = arith.constant 0 : index
    %1 = vector.load %arg2[%c0_2, %c0_3] : memref<1x32xf32, #tpu.memory_space<vmem>>, vector<1x32xf32>
    %2 = vector.shape_cast %1 : vector<1x32xf32> to vector<1x1x32xf32>
    %3 = vector.broadcast %2 : vector<1x1x32xf32> to vector<2x8x32xf32>
    %4 = arith.mulf %0, %3 : vector<2x8x32xf32>
    %cst = arith.constant dense<0.000000e+00> : vector<2x8xf32>
    %5 = vector.multi_reduction <add>, %4, %cst [2] : vector<2x8x32xf32> to vector<2x8xf32>
    %6 = tpu.iota {dimensions = array<i32: 0>} : vector<8x8xi32>
    %7 = tpu.iota {dimensions = array<i32: 1>} : vector<8x8xi32>
    %8 = arith.cmpi slt, %7, %6 : vector<8x8xi32>
    %9 = vector.shape_cast %5 : vector<2x8xf32> to vector<2x8x1xf32>
    %10 = vector.shape_cast %5 : vector<2x8xf32> to vector<2x1x8xf32>
    %11 = vector.broadcast %10 : vector<2x1x8xf32> to vector<2x8x8xf32>
    %12 = vector.broadcast %9 : vector<2x8x1xf32> to vector<2x8x8xf32>
    %13 = arith.cmpf olt, %11, %12 : vector<2x8x8xf32>
    %14 = vector.broadcast %10 : vector<2x1x8xf32> to vector<2x8x8xf32>
    %15 = vector.broadcast %9 : vector<2x8x1xf32> to vector<2x8x8xf32>
    %16 = arith.cmpf oeq, %14, %15 : vector<2x8x8xf32>
    %17 = vector.shape_cast %8 : vector<8x8xi1> to vector<1x8x8xi1>
    %18 = vector.broadcast %17 : vector<1x8x8xi1> to vector<2x8x8xi1>
    %19 = arith.andi %16, %18 : vector<2x8x8xi1>
    %20 = arith.ori %13, %19 : vector<2x8x8xi1>
    %21 = arith.extui %20 : vector<2x8x8xi1> to vector<2x8x8xi32>
    %cst_4 = arith.constant dense<0> : vector<2x8xi32>
    %22 = vector.multi_reduction <add>, %21, %cst_4 [2] : vector<2x8x8xi32> to vector<2x8xi32>
    %23 = vector.shape_cast %22 : vector<2x8xi32> to vector<2x1x8xi32>
    %24 = vector.shape_cast %6 : vector<8x8xi32> to vector<1x8x8xi32>
    %25 = vector.broadcast %23 : vector<2x1x8xi32> to vector<2x8x8xi32>
    %26 = vector.broadcast %24 : vector<1x8x8xi32> to vector<2x8x8xi32>
    %27 = arith.cmpi eq, %25, %26 : vector<2x8x8xi32>
    %28 = arith.extui %27 : vector<2x8x8xi1> to vector<2x8x8xi32>
    %29 = arith.sitofp %28 : vector<2x8x8xi32> to vector<2x8x8xf32>
    "tpu.trace_start"() <{level = 10 : i32, message = "bkt,btd->bkd"}> : () -> ()
    %cst_5 = arith.constant dense<0.000000e+00> : vector<2x8x32xf32>
    %30 = tpu.matmul %29, %0, %cst_5 {dimension_numbers = #tpu.dot_dimension_numbers<[2], [1], [1], [2], [0, 0, 0, 1, 1, 2], [0], [0]>} : vector<2x8x8xf32>, vector<2x8x32xf32>, vector<2x8x32xf32> -> vector<2x8x32xf32>
    "tpu.trace_stop"() : () -> ()
    %c0_6 = arith.constant 0 : index
    %c0_7 = arith.constant 0 : index
    %c0_8 = arith.constant 0 : index
    %31 = vector.load %arg3[%c0_6, %c0_7, %c0_8] : memref<2x8x32xf32, #tpu.memory_space<vmem>>, vector<2x8x32xf32>
    tpu.vector_store %arg3[%c0_6, %c0_7, %c0_8], %30 {strides = array<i32>} : memref<2x8x32xf32, #tpu.memory_space<vmem>>, vector<2x8x32xf32>,
    return
  }
  func.func @transform_0(%arg0: i32) -> (i32, i32, i32) {
    %c0_i32 = arith.constant 0 : i32
    %c0_i32_0 = arith.constant 0 : i32
    %c0_i32_1 = arith.constant 0 : i32
    return %arg0, %c0_i32, %c0_i32_0 : i32, i32, i32
  }
  func.func @transform_1(%arg0: i32) -> (i32, i32) {
    %c0_i32 = arith.constant 0 : i32
    %c0_i32_0 = arith.constant 0 : i32
    %c0_i32_1 = arith.constant 0 : i32
    return %c0_i32, %c0_i32_0 : i32, i32
  }
  func.func @transform_2(%arg0: i32) -> (i32, i32, i32) {
    %c0_i32 = arith.constant 0 : i32
    %c0_i32_0 = arith.constant 0 : i32
    %c0_i32_1 = arith.constant 0 : i32
    return %arg0, %c0_i32, %c0_i32_0 : i32, i32, i32
  }
}

</mosaic_0001>

<bundles_post_ra>
// kernel: tpu_custom_call.1
= control target key start
LH: loop header
LB: loop body
LE: loop exit
PB: predicated region body
PF: predicated region fallthrough
CT: control target
= control target key end

     0   :  { %7 = vsyncpa [#allocation3], 0  ;;  %s1365_s0 = inlined_call_operand.hbm [shape: f32[2,8,32], index: 0, kind: input, shape index: {}]   ;;  %s1366_s1 = inlined_call_operand.hbm [shape: f32[1,32], index: 1, kind: input, shape index: {}]   ;;  %s1367_s2 = inlined_call_operand.hbm [shape: f32[2,8,32], index: 2, kind: output, shape index: {}]  }
   0x1   :  { %8 = vsyncpa [#allocation6], 0 }
   0x2   :  { %9 = vsyncpa [#allocation4], 0  ;;  %s991_s9 = smov [#allocation2]   ;;  %s919_s13 = scalar_lea.hbm %s1365_s0, 256 }
   0x3   :  { %s15_s10 = sshll.u32 %s991_s9, 4  ;;  %p920_p0 = scmp.ne.s32.totalorder %s1365_s0, %s919_s13  ;;  %s16_s10 = int_to_ptr.vmem [resolvable:$true] %s15_s10 }
   0x4   :  { %p923_p1 = scmp.lt.u32.totalorder %s919_s13, %s1365_s0 }
   0x6   :  { %p925_p2 = pnand %p923_p1, %p920_p0 }
   0x8   :  { %928 = shalt.err (!%p925_p2)
}
   0x9   :  { %s929_s18 = scalar_lea.vmem %s16_s10, 256  ;;  %p934_p4 = scmp.lt.s32.totalorder %s16_s10, %s16_s10 }
   0xa   :  { %p930_p3 = scmp.ne.s32.totalorder %s16_s10, %s929_s18  ;;  %p935_p5 = scmp.lt.s32.totalorder %s929_s18, %s929_s18 }
   0xc   :  { %p936_p6 = por %p935_p5, %p934_p4 }
   0xe   :  { %p937_p7 = pnand %p936_p6, %p930_p3 }
  0x10   :  { %940 = shalt.err (!%p937_p7)
}
  0x11   :  { %s992_s19 = smov 128   ;;  %s993_s20 = smov 8  }
  0x12   :  { %21 = dma.hbm_to_vmem [thread:$0]  %s1365_s0, 256, %s16_s10, [#allocation3], %s992_s19, %s992_s19, %s993_s20  }
  0x13   :  { %s994_s23 = smov [#allocation5]   ;;  %s941_s27 = scalar_lea.hbm %s1366_s1, 16 }
  0x14   :  { %s28_s24 = sshll.u32 %s994_s23, 4  ;;  %p942_p8 = scmp.ne.s32.totalorder %s1366_s1, %s941_s27  ;;  %s29_s24 = int_to_ptr.vmem [resolvable:$true] %s28_s24 }
  0x15   :  { %p945_p9 = scmp.lt.u32.totalorder %s941_s27, %s1366_s1 }
  0x17   :  { %p947_p10 = pnand %p945_p9, %p942_p8 }
  0x19   :  { %950 = shalt.err (!%p947_p10)
}
  0x1a   :  { %s951_s4 = scalar_lea.vmem %s29_s24, 16  ;;  %s955_s0 = scalar_lea.vmem %s29_s24, 32 }
  0x1b   :  { %p952_p11 = scmp.ne.s32.totalorder %s29_s24, %s951_s4  ;;  %p956_p12 = scmp.lt.s32.totalorder %s29_s24, %s29_s24 }
  0x1c   :  { %p957_p13 = scmp.lt.s32.totalorder %s955_s0, %s951_s4 }
  0x1e   :  { %p958_p0 = por %p957_p13, %p956_p12 }
  0x20   :  { %p959_p1 = pnand %p958_p0, %p952_p11 }
  0x22   :  { %962 = shalt.err (!%p959_p1)
}
  0x23   :  { %31 = dma.hbm_to_vmem [thread:$0]  %s1366_s1, 16, %s29_s24, [#allocation6]  }
  0x24   :  { %985 = dma.done.wait [#allocation3], 256  }
  0x25   :  { %986 = vsyncadd [#allocation3], 4294967040 }
  0x26   :  { %987 = dma.done.wait [#allocation6], 16  }
  0x27   :  { %988 = vsyncadd [#allocation6], 4294967280  ;;  %v56_v0 = vlaneseq  ;;  %v995_v1 = vmov 0   ;;  %v1057_v8 = vld [vmem:[#allocation2] sm:$0xff]  ;;  %v836_v9 = vld [vmem:[#allocation5] ss:$0 sm:$0xff] }
  0x28   :  { %878 = vset.pattern.permute.xlu0 %v995_v1  ;;  %877 = vset.pattern.permute.xlu1 %v995_v1  ;;  %vm1368_vm1 = vcmask 261120   ;;  %v1059_v10 = vld [vmem:[#allocation2 + $0x8] sm:$0xff]  ;;  %v47_v11 = vmul.f32 %v836_v9, %v1057_v8  ;;  %s998_s1 = smov [#allocation7]  }
  0x29   :  { %v1043_v2 = vshrl.u32 %v56_v0, 7  ;;  %v1045_v3 = vand.u32 127, %v56_v0  ;;  %v48_v12 = vmul.f32 %v836_v9, %v1059_v10  ;;  %s823_s7 = sshll.u32 %s998_s1, 4  ;;  %s824_s7 = int_to_ptr.vmem [resolvable:$true] %s823_s7 }
  0x2a   :  { %v50_v15 = vsel %vm1368_vm1, %v47_v11, 0.0  ;;  %s963_s8 = scalar_lea.vmem %s824_s7, 256  ;;  %p968_p3 = scmp.lt.s32.totalorder %s824_s7, %s824_s7 }
  0x2b   :  { %vm60_vm0 = vcmp.lt.s32.totalorder %v1045_v3, %v1043_v2  ;;  %v1050_v4 = vsub.s32 0, %v1043_v2  ;;  %v1053_v5 = vsub.s32 1, %v1043_v2  ;;  %v1065_v14 = vsub.s32 3, %v1043_v2  ;;  %51 = vadd.xlane.f32.xlu0 %v50_v15  ;;  %p964_p2 = scmp.ne.s32.totalorder %s824_s7, %s963_s8  ;;  %p969_p4 = scmp.lt.s32.totalorder %s963_s8, %s963_s8 }
  0x2c   :  { %v177_v6 = vsel %vm60_vm0, 1, %v995_v1  ;;  %v53_v16 = vsel %vm1368_vm1, %v48_v12, 0.0  ;;  %v1071_v18 = vsub.s32 4, %v1043_v2  ;;  %v1075_v20 = vsub.s32 5, %v1043_v2 }
  0x2d   :  { %v181_v7 = vrot.slane %v177_v6, %v1050_v4  ;;  %v188_v13 = vrot.slane %v177_v6, %v1053_v5  ;;  %v202_v17 = vrot.slane %v177_v6, %v1065_v14  ;;  %v1079_v22 = vsub.s32 6, %v1043_v2  ;;  %p970_p5 = por %p969_p4, %p968_p3 }
  0x2e   :  { %v209_v19 = vrot.slane %v177_v6, %v1071_v18  ;;  %v216_v21 = vrot.slane %v177_v6, %v1075_v20  ;;  %v1083_v24 = vsub.s32 7, %v1043_v2  ;;  %v1087_v26 = vsub.s32 2, %v1043_v2 }
  0x2f   :  { %183 = vbcast.lane.b32.xlu1 %v181_v7, 256  ;;  %54 = vadd.xlane.f32.xlu0 %v53_v16  ;;  %v223_v23 = vrot.slane %v177_v6, %v1079_v22  ;;  %p971_p6 = pnand %p970_p5, %p964_p2 }
  0x30   :  { %v230_v25 = vrot.slane %v177_v6, %v1083_v24  ;;  %v195_v27 = vrot.slane %v177_v6, %v1087_v26 }
  0x33   :  { %190 = vbcast.lane.b32.xlu1 %v188_v13, 256 }
  0x37   :  { %204 = vbcast.lane.b32.xlu1 %v202_v17, 256 }
  0x3b   :  { %211 = vbcast.lane.b32.xlu1 %v209_v19, 256 }
  0x3f   :  { %218 = vbcast.lane.b32.xlu1 %v216_v21, 256 }
  0x43   :  { %225 = vbcast.lane.b32.xlu1 %v223_v23, 256 }
  0x45   :  { %197 = vbcast.lane.b32.xlu0 %v195_v27, 256 }
  0x47   :  { %232 = vbcast.lane.b32.xlu1 %v230_v25, 256 }
  0xa1   :  { %v184_v28 = vpop.permute.xlu1 %183 }
  0xa2   :  { %vm234_vm8 = vcmp.ne.s32.totalorder %v184_v28, 0 }
  0xa5   :  { %v191_v29 = vpop.permute.xlu1 %190 }
  0xa6   :  { %vm235_vm2 = vcmp.ne.s32.totalorder %v191_v29, 0 }
  0xa9   :  { %v1090_v30 = vpop.permute.xlu1 %204 }
  0xad   :  { %v1092_v31 = vpop.permute.xlu1 %211 }
  0xb1   :  { %v1100_v35 = vpop.permute.xlu1 %218 }
  0xb2   :  { %vm239_vm1 = vcmp.ne.s32.totalorder %v1100_v35, 0 }
  0xb5   :  { %v1117_v42 = vpop.permute.xlu1 %225 }
  0xb8   :  { %v1094_v32 = vpop.xlane.xlu0 %51 }
  0xb9   :  { %v70_v33 = vrot.slane %v1094_v32, %v1053_v5  ;;  %v66_v34 = vrot.slane %v1094_v32, %v1050_v4  ;;  %v74_v37 = vrot.slane %v1094_v32, %v1087_v26  ;;  %v78_v45 = vrot.slane %v1094_v32, %v1065_v14  ;;  %v1145_v50 = vpop.permute.xlu1 %232 }
  0xba   :  { %v82_v48 = vrot.slane %v1094_v32, %v1071_v18  ;;  %v1140_v49 = vrot.slane %v1094_v32, %v1083_v24  ;;  %v86_v53 = vrot.slane %v1094_v32, %v1075_v20  ;;  %v90_v58 = vrot.slane %v1094_v32, %v1079_v22 }
  0xbb   :  { %vm160_vm3 = vcmp.eq.f32.partialorder %v1094_v32, %v70_v33  ;;  %vm144_vm4 = vcmp.lt.f32.partialorder %v1094_v32, %v70_v33  ;;  %vm159_vm5 = vcmp.eq.f32.partialorder %v1094_v32, %v66_v34  ;;  %vm143_vm7 = vcmp.lt.f32.partialorder %v1094_v32, %v66_v34 }
  0xbc   :  { %v1103_v36 = vpop.xlane.xlu0 %54  ;;  %vm243_vm6 = vmand %vm160_vm3, %vm235_vm2  ;;  %vm161_vm12 = vcmp.eq.f32.partialorder %v1094_v32, %v74_v37  ;;  %vm145_vm0 = vcmp.lt.f32.partialorder %v1094_v32, %v74_v37 }
  0xbd   :  { %v106_v38 = vrot.slane %v1103_v36, %v1087_v26  ;;  %vm259_vm9 = vmor %vm144_vm4, %vm243_vm6  ;;  %v98_v39 = vrot.slane %v1103_v36, %v1050_v4  ;;  %v102_v43 = vrot.slane %v1103_v36, %v1053_v5  ;;  %v110_v51 = vrot.slane %v1103_v36, %v1065_v14 }
  0xbe   :  { %v275_v40 = vsel %vm259_vm9, 1, %v995_v1  ;;  %vm242_vm10 = vmand %vm159_vm5, %vm234_vm8  ;;  %v114_v54 = vrot.slane %v1103_v36, %v1071_v18  ;;  %v118_v60 = vrot.slane %v1103_v36, %v1075_v20  ;;  %v122_v0 = vrot.slane %v1103_v36, %v1079_v22 }
  0xbf   :  { %294 = vperm.xlu0 %878, %v275_v40   ;;  %vm258_vm11 = vmor %vm143_vm7, %vm242_vm10  ;;  %vm169_vm14 = vcmp.eq.f32.partialorder %v1103_v36, %v106_v38  ;;  %vm167_vm4 = vcmp.eq.f32.partialorder %v1103_v36, %v98_v39  ;;  %vm153_vm5 = vcmp.lt.f32.partialorder %v1103_v36, %v106_v38  ;;  %vm151_vm7 = vcmp.lt.f32.partialorder %v1103_v36, %v98_v39 }
  0xc0   :  { %v198_v41 = vpop.permute.xlu0 %197  ;;  %v274_v44 = vsel %vm258_vm11, 1, %v995_v1  ;;  %vm168_vm10 = vcmp.eq.f32.partialorder %v1103_v36, %v102_v43  ;;  %vm250_vm11 = vmand %vm167_vm4, %vm234_vm8  ;;  %vm238_vm8 = vcmp.ne.s32.totalorder %v1092_v31, 0  ;;  %v126_v9 = vrot.slane %v1103_v36, %v1083_v24 }
  0xc1   :  { %vm236_vm13 = vcmp.ne.s32.totalorder %v198_v41, 0  ;;  %291 = vperm.xlu1 %877, %v274_v44   ;;  %v1243_v31 = vsub.s32 %v1045_v3, %v1043_v2 }
  0xc2   :  { %vm244_vm15 = vmand %vm161_vm12, %vm236_vm13  ;;  %vm152_vm12 = vcmp.lt.f32.partialorder %v1103_v36, %v102_v43 }
  0xc3   :  { %vm252_vm3 = vmand %vm169_vm14, %vm236_vm13  ;;  %vm237_vm13 = vcmp.ne.s32.totalorder %v1090_v30, 0 }
  0xc4   :  { %vm260_vm6 = vmor %vm145_vm0, %vm244_vm15  ;;  %vm162_vm15 = vcmp.eq.f32.partialorder %v1094_v32, %v78_v45 }
  0xc5   :  { %vm1130_vm9 = vmor %vm153_vm5, %vm252_vm3  ;;  %v276_v47 = vsel %vm260_vm6, 1, %v995_v1  ;;  %vm146_vm3 = vcmp.lt.f32.partialorder %v1094_v32, %v78_v45  ;;  %vm163_vm5 = vcmp.eq.f32.partialorder %v1094_v32, %v82_v48  ;;  %vm166_vm6 = vcmp.eq.f32.partialorder %v1094_v32, %v1140_v49 }
  0xc6   :  { %297 = vperm.xlu0 %878, %v276_v47   ;;  %vm266_vm14 = vmor %vm151_vm7, %vm250_vm11  ;;  %vm1369_vm7 = vcmp.ne.s32.totalorder %v1145_v50, 0  ;;  %v284_v61 = vsel %vm1130_vm9, 1, %v995_v1 }
  0xc7   :  { %v282_v52 = vsel %vm266_vm14, 1, %v995_v1  ;;  %vm251_vm0 = vmand %vm168_vm10, %vm235_vm2  ;;  %vm147_vm2 = vcmp.lt.f32.partialorder %v1094_v32, %v82_v48  ;;  %vm170_vm14 = vcmp.eq.f32.partialorder %v1103_v36, %v110_v51 }
  0xc8   :  { %315 = vperm.xlu1 %877, %v282_v52   ;;  %vm267_vm4 = vmor %vm152_vm12, %vm251_vm0  ;;  %vm154_vm0 = vcmp.lt.f32.partialorder %v1103_v36, %v110_v51 }
  0xc9   :  { %vm245_vm11 = vmand %vm162_vm15, %vm237_vm13  ;;  %v283_v55 = vsel %vm267_vm4, 1, %v995_v1  ;;  %vm164_vm4 = vcmp.eq.f32.partialorder %v1094_v32, %v86_v53 }
  0xca   :  { %vm261_vm10 = vmor %vm146_vm3, %vm245_vm11  ;;  %vm148_vm11 = vcmp.lt.f32.partialorder %v1094_v32, %v86_v53 }
  0xcb   :  { %v277_v56 = vsel %vm261_vm10, 1, %v995_v1  ;;  %vm246_vm12 = vmand %vm163_vm5, %vm238_vm8 }
  0xcc   :  { %vm1174_vm15 = vmand %vm166_vm6, %vm1369_vm7  ;;  %318 = vperm.xlu1 %877, %v283_v55   ;;  %300 = vperm.xlu0 %878, %v277_v56   ;;  %vm171_vm6 = vcmp.eq.f32.partialorder %v1103_v36, %v114_v54  ;;  %vm149_vm7 = vcmp.lt.f32.partialorder %v1094_v32, %v90_v58 }
  0xcd   :  { %vm262_vm3 = vmor %vm147_vm2, %vm246_vm12  ;;  %vm155_vm2 = vcmp.lt.f32.partialorder %v1103_v36, %v114_v54 }
  0xce   :  { %vm253_vm5 = vmand %vm170_vm14, %vm237_vm13  ;;  %v278_v62 = vsel %vm262_vm3, 1, %v995_v1  ;;  %vm240_vm14 = vcmp.ne.s32.totalorder %v1117_v42, 0  ;;  %vm172_vm3 = vcmp.eq.f32.partialorder %v1103_v36, %v118_v60 }
  0xcf   :  { %vm1184_vm10 = vmor %vm154_vm0, %vm253_vm5  ;;  %vm165_vm0 = vcmp.eq.f32.partialorder %v1094_v32, %v90_v58 }
  0xd0   :  { %vm247_vm13 = vmand %vm164_vm4, %vm239_vm1  ;;  %321 = vperm.xlu1 %877, %v284_v61   ;;  %303 = vperm.xlu0 %878, %v278_v62   ;;  %v285_v6 = vsel %vm1184_vm10, 1, %v995_v1  ;;  %vm150_vm4 = vcmp.lt.f32.partialorder %v1094_v32, %v1140_v49 }
  0xd1   :  { %vm263_vm12 = vmor %vm148_vm11, %vm247_vm13 }
  0xd2   :  { %vm254_vm5 = vmand %vm171_vm6, %vm238_vm8  ;;  %v279_v7 = vsel %vm263_vm12, 1, %v995_v1  ;;  %vm156_vm6 = vcmp.lt.f32.partialorder %v1103_v36, %v118_v60  ;;  %vm157_vm12 = vcmp.lt.f32.partialorder %v1103_v36, %v122_v0 }
  0xd3   :  { %vm1203_vm9 = vmor %vm155_vm2, %vm254_vm5  ;;  %vm173_vm2 = vcmp.eq.f32.partialorder %v1103_v36, %v122_v0  ;;  %vm158_vm5 = vcmp.lt.f32.partialorder %v1103_v36, %v126_v9 }
  0xd4   :  { %vm248_vm8 = vmand %vm165_vm0, %vm240_vm14  ;;  %324 = vperm.xlu1 %877, %v285_v6   ;;  %306 = vperm.xlu0 %878, %v279_v7   ;;  %v286_v11 = vsel %vm1203_vm9, 1, %v995_v1  ;;  %vm174_vm0 = vcmp.eq.f32.partialorder %v1103_v36, %v126_v9  ;;  %vm1380_vm9 = vcmp.ne.s32.totalorder %v1145_v50, 0 }
  0xd5   :  { %vm264_vm11 = vmor %vm149_vm7, %vm248_vm8 }
  0xd6   :  { %vm255_vm13 = vmand %vm172_vm3, %vm239_vm1  ;;  %v280_v12 = vsel %vm264_vm11, 1, %v995_v1  ;;  %vm406_vm11 = vcmask 1043459  }
  0xd7   :  { %vm265_vm10 = vmor %vm150_vm4, %vm1174_vm15  ;;  %vm404_vm4 = vcmask 1042434  }
  0xd8   :  { %327 = vperm.xlu1 %877, %v286_v11   ;;  %309 = vperm.xlu0 %878, %v280_v12   ;;  %vm271_vm7 = vmor %vm156_vm6, %vm255_vm13  ;;  %v281_v15 = vsel %vm265_vm10, 1, %v995_v1  ;;  %vm408_vm6 = vcmask 1044484   ;;  %vm410_vm13 = vcmask 1045509   ;;  %vm1371_vm10 = vcmask 1047559  }
  0xd9   :  { %vm256_vm1 = vmand %vm173_vm2, %vm240_vm14  ;;  %v287_v13 = vsel %vm271_vm7, 1, %v995_v1  ;;  %vm402_vm14 = vcmask 1041409   ;;  %vm412_vm2 = vcmask 1046534   ;;  %vm1370_vm7 = vcmask 64512  }
  0xda   :  { %vm272_vm15 = vmor %vm157_vm12, %vm256_vm1 }
  0xdb   :  { %vm257_vm3 = vmand %vm174_vm0, %vm1380_vm9  ;;  %v288_v16 = vsel %vm272_vm15, 1, %v995_v1 }
  0xdc   :  { %330 = vperm.xlu1 %877, %v287_v13   ;;  %312 = vperm.xlu0 %878, %v281_v15   ;;  %vm273_vm8 = vmor %vm158_vm5, %vm257_vm3 }
  0xdd   :  { %v289_v17 = vsel %vm273_vm8, 1, %v995_v1 }
  0xe0   :  { %333 = vperm.xlu1 %877, %v288_v16  }
  0xe4   :  { %336 = vperm.xlu1 %877, %v289_v17  }
 0x13e   :  { %v295_v21 = vpop.permute.xlu0 %294 }
 0x13f   :  { %v345_v35 = vrot.slane %v295_v21, %v1243_v31 }
 0x140   :  { %v292_v19 = vpop.permute.xlu1 %291 }
 0x141   :  { %v341_v34 = vrot.slane %v292_v19, %v1243_v31 }
 0x143   :  { %v403_v3 = vsel %vm402_vm14, %v345_v35, %v341_v34  ;;  %v453_v34 = vrot.slane %v1043_v2, %v1050_v4  ;;  %v457_v35 = vrot.slane %v1043_v2, %v1053_v5  ;;  %v465_v4 = vrot.slane %v1043_v2, %v1065_v14 }
 0x145   :  { %v298_v23 = vpop.permute.xlu0 %297 }
 0x146   :  { %v349_v1 = vrot.slane %v298_v23, %v1243_v31 }
 0x147   :  { %v316_v25 = vpop.permute.xlu1 %315 }
 0x148   :  { %v405_v41 = vsel %vm404_vm4, %v349_v1, %v403_v3  ;;  %v373_v52 = vrot.slane %v316_v25, %v1243_v31 }
 0x14b   :  { %v319_v27 = vpop.permute.xlu1 %318  ;;  %v301_v28 = vpop.permute.xlu0 %300 }
 0x14c   :  { %v353_v36 = vrot.slane %v301_v28, %v1243_v31  ;;  %v377_v47 = vrot.slane %v319_v27, %v1243_v31  ;;  %v996_v27 = vmov 0.0  }
 0x14d   :  { %859 = vmatprep.subr.mxu0 %v996_v27  ;;  %864 = vmatprep.subr.mxu1 %v996_v27 }
 0x14e   :  { %v407_v43 = vsel %vm406_vm11, %v353_v36, %v405_v41  ;;  %v416_v58 = vsel %vm402_vm14, %v377_v47, %v373_v52  ;;  %860 = vmatpush3.msra.mxu0 %v1057_v8  ;;  %865 = vmatpush3.msra.mxu1 %v1059_v10 }
 0x14f   :  { %v322_v29 = vpop.permute.xlu1 %321  ;;  %v304_v30 = vpop.permute.xlu0 %303 }
 0x150   :  { %v357_v37 = vrot.slane %v304_v30, %v1243_v31  ;;  %v381_v50 = vrot.slane %v322_v29, %v1243_v31 }
 0x152   :  { %v409_v44 = vsel %vm408_vm6, %v357_v37, %v407_v43  ;;  %v417_v61 = vsel %vm404_vm4, %v381_v50, %v416_v58  ;;  %v477_v43 = vrot.slane %v1043_v2, %v1079_v22  ;;  %v481_v50 = vrot.slane %v1043_v2, %v1083_v24 }
 0x153   :  { %v325_v32 = vpop.permute.xlu1 %324  ;;  %v307_v33 = vpop.permute.xlu0 %306 }
 0x154   :  { %v361_v40 = vrot.slane %v307_v33, %v1243_v31  ;;  %v385_v53 = vrot.slane %v325_v32, %v1243_v31 }
 0x156   :  { %v411_v48 = vsel %vm410_vm13, %v361_v40, %v409_v44  ;;  %v418_v63 = vsel %vm406_vm11, %v385_v53, %v417_v61 }
 0x157   :  { %v328_v38 = vpop.permute.xlu1 %327  ;;  %v310_v39 = vpop.permute.xlu0 %309 }
 0x158   :  { %v365_v42 = vrot.slane %v310_v39, %v1243_v31  ;;  %v389_v55 = vrot.slane %v328_v38, %v1243_v31  ;;  %v461_v38 = vrot.slane %v1043_v2, %v1087_v26  ;;  %v473_v26 = vrot.slane %v1043_v2, %v1075_v20 }
 0x15a   :  { %v413_v51 = vsel %vm412_vm2, %v365_v42, %v411_v48  ;;  %v419_v7 = vsel %vm408_vm6, %v389_v55, %v418_v63  ;;  %v469_v42 = vrot.slane %v1043_v2, %v1071_v18 }
 0x15b   :  { %v331_v45 = vpop.permute.xlu1 %330  ;;  %v313_v46 = vpop.permute.xlu0 %312 }
 0x15c   :  { %v369_v49 = vrot.slane %v313_v46, %v1243_v31  ;;  %v393_v59 = vrot.slane %v331_v45, %v1243_v31 }
 0x15e   :  { %v415_v54 = vsel %vm1371_vm10, %v369_v49, %v413_v51  ;;  %v420_v11 = vsel %vm410_vm13, %v393_v59, %v419_v7 }
 0x15f   :  { %v334_v56 = vpop.permute.xlu1 %333  ;;  %v424_v57 = vsel %vm1370_vm7, %v415_v54, 0 }
 0x160   :  { %v426_v60 = vshrl.u32 %v424_v57, 16  ;;  %v397_v62 = vrot.slane %v334_v56, %v1243_v31  ;;  %v425_v6 = vand.u32 65535, %v424_v57 }
 0x162   :  { %v428_v0 = vcvt.s32.f32 %v426_v60  ;;  %v421_v13 = vsel %vm412_vm2, %v397_v62, %v420_v11  ;;  %v427_v15 = vcvt.s32.f32 %v425_v6 }
 0x163   :  { %v337_v9 = vpop.permute.xlu1 %336 }
 0x164   :  { %v401_v12 = vrot.slane %v337_v9, %v1243_v31  ;;  %431 = vadd.xlane.f32.xlu0 %v428_v0 }
 0x166   :  { %v422_v16 = vsel %vm1371_vm10, %v401_v12, %v421_v13 }
 0x167   :  { %v437_v17 = vsel %vm1370_vm7, %v422_v16, 0 }
 0x168   :  { %429 = vadd.xlane.f32.xlu0 %v427_v15  ;;  %v439_v19 = vshrl.u32 %v437_v17, 16  ;;  %v438_v21 = vand.u32 65535, %v437_v17 }
 0x16a   :  { %v441_v23 = vcvt.s32.f32 %v439_v19  ;;  %v440_v25 = vcvt.s32.f32 %v438_v21 }
 0x16c   :  { %444 = vadd.xlane.f32.xlu1 %v441_v23  ;;  %442 = vadd.xlane.f32.xlu0 %v440_v25 }
 0x1f1   :  { %v432_v28 = vpop.xlane.xlu0 %431 }
 0x1f2   :  { %v434_v29 = vcvt.f32.s32 %v432_v28 }
 0x1f4   :  { %v435_v32 = vshll.u32 %v434_v29, 16 }
 0x1f5   :  { %v430_v30 = vpop.xlane.xlu0 %429 }
 0x1f6   :  { %v433_v33 = vcvt.f32.s32 %v430_v30 }
 0x1f8   :  { %v436_v1 = vadd.s32 %v435_v32, %v433_v33 }
 0x1f9   :  { %v445_v36 = vpop.xlane.xlu1 %444  ;;  %v443_v37 = vpop.xlane.xlu0 %442 }
 0x1fa   :  { %v447_v8 = vcvt.f32.s32 %v445_v36  ;;  %v446_v39 = vcvt.f32.s32 %v443_v37  ;;  %vm482_vm12 = vcmp.eq.s32.totalorder %v436_v1, %v453_v34  ;;  %vm483_vm1 = vcmp.eq.s32.totalorder %v436_v1, %v457_v35 }
 0x1fb   :  { %v837_v10 = vsel %vm482_vm12, 1.0, %v996_v27  ;;  %v838_v3 = vsel %vm483_vm1, 1.0, %v996_v27  ;;  %vm484_vm0 = vcmp.eq.s32.totalorder %v436_v1, %v461_v38  ;;  %vm485_vm15 = vcmp.eq.s32.totalorder %v436_v1, %v465_v4 }
 0x1fc   :  { %v448_v40 = vshll.u32 %v447_v8, 16  ;;  %v879_v41 = vpack.i.bf16 %v838_v3, %v837_v10  ;;  %v839_v14 = vsel %vm484_vm0, 1.0, %v996_v27  ;;  %vm486_vm12 = vcmp.eq.s32.totalorder %v436_v1, %v469_v42 }
 0x1fd   :  { %v840_v48 = vsel %vm485_vm15, 1.0, %v996_v27  ;;  %v841_v49 = vsel %vm486_vm12, 1.0, %v996_v27  ;;  %vm487_vm0 = vcmp.eq.s32.totalorder %v436_v1, %v473_v26  ;;  %vm489_vm15 = vcmp.eq.s32.totalorder %v436_v1, %v481_v50 }
 0x1fe   :  { %v449_v5 = vadd.s32 %v448_v40, %v446_v39  ;;  %880 = vperm.xlu1 %877, %v879_v41   ;;  %v842_v55 = vsel %vm487_vm0, 1.0, %v996_v27  ;;  %v844_v24 = vsel %vm489_vm15, 1.0, %v996_v27 }
 0x200   :  { %vm492_vm5 = vcmp.eq.s32.totalorder %v449_v5, %v461_v38  ;;  %vm490_vm9 = vcmp.eq.s32.totalorder %v449_v5, %v453_v34  ;;  %vm491_vm3 = vcmp.eq.s32.totalorder %v449_v5, %v457_v35  ;;  %vm493_vm8 = vcmp.eq.s32.totalorder %v449_v5, %v465_v4 }
 0x201   :  { %v847_v44 = vsel %vm492_vm5, 1.0, %v996_v27  ;;  %v845_v45 = vsel %vm490_vm9, 1.0, %v996_v27  ;;  %v846_v46 = vsel %vm491_vm3, 1.0, %v996_v27  ;;  %vm494_vm1 = vcmp.eq.s32.totalorder %v449_v5, %v469_v42 }
 0x202   :  { %v889_v18 = vpack.i.bf16 %v847_v44, %v839_v14  ;;  %v884_v47 = vpack.i.bf16 %v846_v46, %v845_v45  ;;  %v848_v20 = vsel %vm493_vm8, 1.0, %v996_v27  ;;  %v849_v22 = vsel %vm494_vm1, 1.0, %v996_v27 }
 0x203   :  { %vm495_vm7 = vcmp.eq.s32.totalorder %v449_v5, %v473_v26  ;;  %vm496_vm10 = vcmp.eq.s32.totalorder %v449_v5, %v477_v43  ;;  %v894_v51 = vpack.i.bf16 %v848_v20, %v840_v48  ;;  %v899_v52 = vpack.i.bf16 %v849_v22, %v841_v49 }
 0x204   :  { %890 = vperm.xlu1 %877, %v889_v18   ;;  %885 = vperm.xlu0 %878, %v884_v47   ;;  %vm488_vm5 = vcmp.eq.s32.totalorder %v436_v1, %v477_v43  ;;  %v850_v53 = vsel %vm495_vm7, 1.0, %v996_v27  ;;  %v851_v54 = vsel %vm496_vm10, 1.0, %v996_v27  ;;  %vm497_vm9 = vcmp.eq.s32.totalorder %v449_v5, %v481_v50 }
 0x205   :  { %v843_v56 = vsel %vm488_vm5, 1.0, %v996_v27  ;;  %v904_v57 = vpack.i.bf16 %v850_v53, %v842_v55  ;;  %v852_v2 = vsel %vm497_vm9, 1.0, %v996_v27  ;;  %vm997_vm7 = vmmov 0  }
 0x206   :  { %v909_v58 = vpack.i.bf16 %v851_v54, %v843_v56  ;;  %v914_v59 = vpack.i.bf16 %v852_v2, %v844_v24  ;;  %861 = vmatprep.mubr.msk.f32.mxu0 %vm997_vm7, %v996_v27  ;;  %866 = vmatprep.mubr.msk.f32.mxu1 %vm997_vm7, %v996_v27 }
 0x208   :  { %895 = vperm.xlu1 %877, %v894_v51   ;;  %900 = vperm.xlu0 %878, %v899_v52  }
 0x20c   :  { %905 = vperm.xlu1 %877, %v904_v57   ;;  %910 = vperm.xlu0 %878, %v909_v58  }
 0x210   :  { %915 = vperm.xlu1 %877, %v914_v59  }
 0x27d   :  { %v881_v60 = vpop.permute.xlu1 %880 }
 0x27e   :  { %v883_v61 = vunpack.i.h.bf16 %v881_v60  ;;  %v882_v62 = vunpack.i.l.bf16 %v881_v60 }
 0x280   :  { %v569_v12 = vrot.slane %v883_v61, %v1243_v31  ;;  %v565_v13 = vrot.slane %v882_v62, %v1243_v31 }
 0x282   :  { %v594_v32 = vsel %vm402_vm14, %v569_v12, %v565_v13 }
 0x283   :  { %v891_v63 = vpop.permute.xlu1 %890  ;;  %v886_v0 = vpop.permute.xlu0 %885 }
 0x284   :  { %v893_v6 = vunpack.i.h.bf16 %v891_v63  ;;  %v892_v7 = vunpack.i.l.bf16 %v891_v63  ;;  %v888_v9 = vunpack.i.h.bf16 %v886_v0  ;;  %v887_v11 = vunpack.i.l.bf16 %v886_v0 }
 0x286   :  { %v712_v15 = vrot.slane %v888_v9, %v1243_v31  ;;  %v708_v16 = vrot.slane %v887_v11, %v1243_v31  ;;  %v716_v17 = vrot.slane %v893_v6, %v1243_v31  ;;  %v573_v19 = vrot.slane %v892_v7, %v1243_v31 }
 0x287   :  { %v896_v21 = vpop.permute.xlu1 %895  ;;  %v901_v23 = vpop.permute.xlu0 %900 }
 0x288   :  { %v737_v25 = vsel %vm402_vm14, %v712_v15, %v708_v16  ;;  %v898_v27 = vunpack.i.h.bf16 %v896_v21  ;;  %v897_v28 = vunpack.i.l.bf16 %v896_v21  ;;  %v903_v29 = vunpack.i.h.bf16 %v901_v23 }
 0x289   :  { %v902_v30 = vunpack.i.l.bf16 %v901_v23  ;;  %v595_v35 = vsel %vm404_vm4, %v573_v19, %v594_v32  ;;  %v738_v1 = vsel %vm404_vm4, %v716_v17, %v737_v25  ;;  %vm1381_vm14 = vcmask 1047559  }
 0x28a   :  { %v720_v33 = vrot.slane %v898_v27, %v1243_v31  ;;  %v577_v34 = vrot.slane %v897_v28, %v1243_v31  ;;  %v724_v36 = vrot.slane %v903_v29, %v1243_v31  ;;  %vm1382_vm4 = vmmov %vm1381_vm14 }
 0x28b   :  { %v581_v37 = vrot.slane %v902_v30, %v1243_v31  ;;  %v906_v38 = vpop.permute.xlu1 %905  ;;  %v911_v8 = vpop.permute.xlu0 %910 }
 0x28c   :  { %v596_v39 = vsel %vm406_vm11, %v577_v34, %v595_v35  ;;  %v739_v10 = vsel %vm406_vm11, %v720_v33, %v738_v1  ;;  %v908_v3 = vunpack.i.h.bf16 %v906_v38  ;;  %v907_v4 = vunpack.i.l.bf16 %v906_v38 }
 0x28d   :  { %v913_v40 = vunpack.i.h.bf16 %v911_v8  ;;  %v912_v41 = vunpack.i.l.bf16 %v911_v8  ;;  %v597_v26 = vsel %vm408_vm6, %v581_v37, %v596_v39  ;;  %v740_v43 = vsel %vm408_vm6, %v724_v36, %v739_v10 }
 0x28e   :  { %v728_v5 = vrot.slane %v908_v3, %v1243_v31  ;;  %v585_v42 = vrot.slane %v907_v4, %v1243_v31  ;;  %vm1383_vm11 = vcmask 64512  }
 0x28f   :  { %v732_v14 = vrot.slane %v913_v40, %v1243_v31  ;;  %v589_v44 = vrot.slane %v912_v41, %v1243_v31  ;;  %v916_v45 = vpop.permute.xlu1 %915  ;;  %vm1384_vm6 = vmmov %vm1383_vm11 }
 0x290   :  { %v918_v46 = vunpack.i.h.bf16 %v916_v45  ;;  %v917_v18 = vunpack.i.l.bf16 %v916_v45  ;;  %v598_v47 = vsel %vm410_vm13, %v585_v42, %v597_v26  ;;  %v741_v20 = vsel %vm410_vm13, %v728_v5, %v740_v43 }
 0x291   :  { %v599_v49 = vsel %vm412_vm2, %v589_v44, %v598_v47  ;;  %v742_v50 = vsel %vm412_vm2, %v732_v14, %v741_v20  ;;  %vm1385_vm13 = vcmask 261120  }
 0x292   :  { %v736_v22 = vrot.slane %v918_v46, %v1243_v31  ;;  %v593_v48 = vrot.slane %v917_v18, %v1243_v31  ;;  %vm1386_vm10 = vmmov %vm1385_vm13 }
 0x294   :  { %v600_v51 = vsel %vm1381_vm14, %v593_v48, %v599_v49  ;;  %v743_v52 = vsel %vm1382_vm4, %v736_v22, %v742_v50 }
 0x295   :  { %862 = vmatmul.mubr.msk.f32.vlgmr.msra.gmra.mrb[0].mxu0 %vm1383_vm11, %v600_v51  ;;  %867 = vmatmul.mubr.msk.f32.vlgmr.msra.gmra.mrb[0].mxu1 %vm1384_vm6, %v743_v52 }
 0x368   :  { %v669_v53 = vpop.f32.mrb[0].mxu0  ;;  %v812_v54 = vpop.f32.mrb[0].mxu1 }
 0x369   :  { %816 = vst.msk [vmem:[#allocation7] sm:$0xff] %vm1385_vm13, %v669_v53  ;;  %v863_v31 = vpop.f32.mrb[1].mxu0  ;;  %v868_v55 = vpop.f32.mrb[1].mxu1 }
 0x36a   :  { %817 = vst.msk [vmem:[#allocation7 + $0x8] sm:$0xff] %vm1386_vm10, %v812_v54 }
 0x36b   :  { %974 = shalt.err (!%p971_p6)
}
 0x36c   :  { %s975_s11 = scalar_lea.hbm %s1367_s2, 256 }
 0x36d   :  { %p976_p7 = scmp.ne.s32.totalorder %s1367_s2, %s975_s11  ;;  %p979_p8 = scmp.lt.u32.totalorder %s975_s11, %s1367_s2 }
 0x36f   :  { %p981_p9 = pnand %p979_p8, %p976_p7 }
 0x371   :  { %984 = shalt.err (!%p981_p9)
}
 0x372   :  { %829 = dma.vmem_to_hbm [thread:$0]  %s824_s7, 256, %s1367_s2, [#allocation4], %s992_s19, %s992_s19, %s993_s20  }
 0x373   :  { %989 = dma.done.wait [#allocation4], 256  }
 0x374   :  { %990 = vsyncadd [#allocation4], 4294967040 }
 0x375   :  { %833 = vsyncpa [#allocation3], 1 }
 0x376   :  { %834 = vsyncpa [#allocation6], 1 }
 0x377   :  { %835 = vsyncpa [#allocation4], 1 }

</bundles_post_ra>
